<compile_context>
chip_gen: v7x
topology: tpu7x:2x2x1
jax: 0.10.0
libtpu: 0.0.40
codegen_flags: <defaults>
</compile_context>

<pallas_src>
import jax
import jax.numpy as jnp
from jax.experimental import pallas as pl
from jax.experimental.pallas import tpu as pltpu


# ----------------------------------------------------------------------------- #
# Config / constants
# ----------------------------------------------------------------------------- #
MODEL_CFG = dict(
    num_class=21,
    backbone="ResNet50",
    args=dict(feat_extract_layer=["layer1"], pretrained=False),
    channel_reduce=dict(
        in_channels=[256], out_channels=[64], kernel_size=[1], stride=[1], bias=[True]
    ),
)
_BN_EPS = 1e-5
_IFN_STRIDE = 4      # ResNet 'layer1' features are at 1/4 resolution
_KFEAT = 3 * _IFN_STRIDE * _IFN_STRIDE   # 48 patch features per output pixel
_KPAD = 64           # 48 features + 1 ones row (bias fold) + 15 zero rows (sublane align)
_TP_MAX = 4096       # pixels per grid step (lane axis of every tile)


def _round_up(x, n):
    return ((x + n - 1) // n) * n


def _pick_pixel_tile(p, tp_max=_TP_MAX):
    """Pixel-tile (last-dim block) and padded pixel count. Last dim of a block must be a
    multiple of 128 or equal the full array extent."""
    if p <= tp_max:
        return p, p                       # full-extent block, no padding, free reshape
    t = (tp_max // 128) * 128
    while t >= 128:
        if p % t == 0:
            return t, p
        t -= 128
    return tp_max, _round_up(p, tp_max)   # rare: pad pixels, slice afterwards


# ----------------------------------------------------------------------------- #
# Fused Pallas kernel (channel-major):
#   stage 1: synthetic IFN 'layer1' (patchify conv, bias folded, ReLU)  -> VMEM only
#   stage 2: BasicBlock2D = Conv2d(k=1, BN scale folded) + bias + ReLU  -> HBM, lane-dense
# ----------------------------------------------------------------------------- #
def _fused_pyramid_kernel(x_ref, w1_ref, w2_ref, b2_ref, o_ref):
    # x_ref : (1, KPAD, TP) bf16  per-pixel patches (+ ones row), pixels on lanes
    # w1_ref: (256, KPAD)   bf16  IFN 'layer1' weight, bias folded into the ones column
    # w2_ref: (64, 256)     bf16  Conv2d(k=1) weight with BN scale pre-folded (exact)
    # b2_ref: (64, 1)       f32   conv bias + BN shift (folded)
    # o_ref : (1, 64, TP)   f32   channel-major output -> NCHW reshape is free
    h = jnp.dot(w1_ref[...], x_ref[0], preferred_element_type=jnp.float32)   # (256, TP)
    h = jnp.maximum(h, 0.0).astype(jnp.bfloat16)                             # IFN ReLU
    y = jnp.dot(w2_ref[...], h, preferred_element_type=jnp.float32)          # (64, TP)
    o_ref[0] = jnp.maximum(y + b2_ref[...], 0.0).astype(o_ref.dtype)         # BN + ReLU


def fused_pyramid_call(x2, w1t, w2t, b2, *, tp):
    """x2:(N, KPAD, P_pad) bf16; w1t:(256, KPAD) bf16; w2t:(64, 256) bf16; b2:(64,1) f32.
    Returns (N, 64, P_pad) f32 (channel-major, pixels on lanes)."""
    n, kpad, p_pad = x2.shape
    hid = w1t.shape[0]      # 256
    cout = w2t.shape[0]     # 64
    assert p_pad % tp == 0
    flops = 2 * n * p_pad * (kpad * hid + hid * cout)
    bytes_accessed = (x2.size * 2 + n * cout * p_pad * 4
                      + w1t.size * 2 + w2t.size * 2 + b2.size * 4)
    return pl.pallas_call(
        _fused_pyramid_kernel,
        out_shape=jax.ShapeDtypeStruct((n, cout, p_pad), jnp.float32),
        grid_spec=pltpu.PrefetchScalarGridSpec(
            num_scalar_prefetch=0,
            grid=(n, p_pad // tp),
            in_specs=[
                pl.BlockSpec((1, kpad, tp), lambda b, p: (b, 0, p)),   # activations bf16
                pl.BlockSpec((hid, kpad), lambda b, p: (0, 0)),        # IFN weight bf16
                pl.BlockSpec((cout, hid), lambda b, p: (0, 0)),        # reduce weight bf16
                pl.BlockSpec((cout, 1), lambda b, p: (0, 0)),          # folded bias f32
            ],
            out_specs=pl.BlockSpec((1, cout, tp), lambda b, p: (b, 0, p)),
        ),
        compiler_params=pltpu.CompilerParams(
            dimension_semantics=("parallel", "parallel"),   # batch x pixel-tile: megacore
            vmem_limit_bytes=32 * 1024 * 1024,
        ),
        cost_estimate=pl.CostEstimate(
            flops=int(flops), transcendentals=0, bytes_accessed=int(bytes_accessed)),
    )(x2, w1t, w2t, b2)


# ----------------------------------------------------------------------------- #
# Parameters (deterministic, synthetic, matching the module's shapes)
# ----------------------------------------------------------------------------- #
def init_params(key):
    cfg = MODEL_CFG
    cin = cfg["channel_reduce"]["in_channels"][0]    # 256
    cout = cfg["channel_reduce"]["out_channels"][0]  # 64
    s = _IFN_STRIDE
    k = jax.random.split(key, 8)

    params = {}
    # Synthetic IFN 'layer1': 4x4 / stride-4 patchify conv + bias + ReLU.
    # Rows follow PyTorch Conv2d im2col order (Cin, kh, kw): equals
    # torch_conv.weight.reshape(256, 3*4*4).T for a real checkpoint.
    params["ifn_w"] = 0.05 * jax.random.normal(k[0], (3 * s * s, cin), jnp.float32)
    params["ifn_b"] = 0.1 * jax.random.normal(k[1], (cin,), jnp.float32)

    # BasicBlock2D: Conv2d(256, 64, kernel_size=1, stride=1, bias=True) + BN(64) + ReLU.
    # PyTorch conv weight (Cout, Cin, 1, 1) stored transposed as (Cin, Cout).
    params["red_w"] = 0.05 * jax.random.normal(k[2], (cin, cout), jnp.float32)
    params["red_b"] = 0.1 * jax.random.normal(k[3], (cout,), jnp.float32)
    params["bn_gamma"] = 1.0 + 0.1 * jax.random.normal(k[4], (cout,), jnp.float32)
    params["bn_beta"] = 0.1 * jax.random.normal(k[5], (cout,), jnp.float32)
    params["bn_mean"] = 0.1 * jax.random.normal(k[6], (cout,), jnp.float32)
    params["bn_var"] = jnp.abs(1.0 + 0.1 * jax.random.normal(k[7], (cout,), jnp.float32))
    return params


# ----------------------------------------------------------------------------- #
# Forward (mirrors PyramidFeat2D.forward, eval mode)
# ----------------------------------------------------------------------------- #
@jax.jit
def pyramid_feat2d_forward(images_nchw, params):
    """images_nchw: (N, 3, H, W) f32.  Returns {'layer1_feat2d': (N, 64, H/4, W/4)} f32."""
    cfg = MODEL_CFG
    n, c, h, w = images_nchw.shape
    s = _IFN_STRIDE
    ho, wo = h // s, w // s
    p = ho * wo
    cin = params["red_w"].shape[0]    # 256
    cout = params["red_w"].shape[1]   # 64
    kfeat = c * s * s                 # 48

    # ---- glue: NCHW -> (N, 48, Ho*Wo) patches, PyTorch Conv2d im2col (cin, kh, kw)
    # order on the sublane axis; pixels on the lane (last) axis.  Cast bf16 FIRST so the
    # transpose moves half the bytes; pad/concat fuses into the same XLA pass.
    x = images_nchw.astype(jnp.bfloat16).reshape(n, c, ho, s, wo, s)
    x = jnp.transpose(x, (0, 1, 3, 5, 2, 4)).reshape(n, kfeat, p)
    x2 = jnp.concatenate(
        [x,
         jnp.ones((n, 1, p), jnp.bfloat16),                      # ones row: IFN bias fold
         jnp.zeros((n, _KPAD - kfeat - 1, p), jnp.bfloat16)],    # zero rows: sublane align
        axis=1)                                                  # (N, 64, P)

    tp, p_pad = _pick_pixel_tile(p)
    if p_pad != p:
        x2 = jnp.pad(x2, ((0, 0), (0, 0), (0, p_pad - p)))

    # ---- fold eval-mode BatchNorm2d: scale into the conv weight (exact, before the bf16
    # cast), conv bias + BN shift into one per-channel f32 bias
    scale = params["bn_gamma"] * jax.lax.rsqrt(params["bn_var"] + _BN_EPS)
    b2 = ((params["red_b"] - params["bn_mean"]) * scale + params["bn_beta"])
    b2 = b2[:, None].astype(jnp.float32)                                     # (64, 1)

    # stage-1 weight transposed to channel-major, bias as the ones column, zero-padded
    w1t = jnp.concatenate(
        [params["ifn_w"].T,                                                  # (256, 48)
         params["ifn_b"][:, None],                                           # (256, 1)
         jnp.zeros((cin, _KPAD - kfeat - 1), jnp.float32)], axis=1
    ).astype(jnp.bfloat16)                                                   # (256, 64)
    # stage-2 weight with BN scale folded, transposed: (64, 256)
    w2t = (params["red_w"] * scale[None, :]).T.astype(jnp.bfloat16)

    # ---- Pallas: fused IFN 'layer1' + BasicBlock2D (Conv k=1 + BN + ReLU), channel-major
    out = fused_pyramid_call(x2, w1t, w2t, b2, tp=tp)                        # (N, 64, P_pad)
    if p_pad != p:
        out = out[:, :, :p]
    # NCHW output falls out for free (no transpose): the kernel already stored (N, C, HW).
    feat_nchw = out.reshape(n, cout, ho, wo)

    batch_dict = {}
    for _idx, _layer in enumerate(cfg["args"]["feat_extract_layer"]):
        batch_dict[_layer + "_feat2d"] = feat_nchw
    # (eval mode -> no detach_() semantics needed)
    return batch_dict


# ----------------------------------------------------------------------------- #
# Pure-JAX reference (f32 throughout) for a tolerance check
# ----------------------------------------------------------------------------- #
def _reference_forward(images_nchw, params):
    n, c, h, w = images_nchw.shape
    s = _IFN_STRIDE
    ho, wo = h // s, w // s
    x = images_nchw.reshape(n, c, ho, s, wo, s)
    x = jnp.transpose(x, (0, 2, 4, 1, 3, 5)).reshape(n * ho * wo, c * s * s)
    h1 = jnp.maximum(x @ params["ifn_w"] + params["ifn_b"], 0.0)
    scale = params["bn_gamma"] / jnp.sqrt(params["bn_var"] + _BN_EPS)
    bias = (params["red_b"] - params["bn_mean"]) * scale + params["bn_beta"]
    y = jnp.maximum(h1 @ params["red_w"] * scale + bias, 0.0)
    cout = params["red_w"].shape[1]
    return jnp.transpose(y.reshape(n, ho, wo, cout), (0, 3, 1, 2))


if __name__ == "__main__":
    key = jax.random.PRNGKey(0)
    k_img, k_par = jax.random.split(key)
    params = init_params(k_par)

    # Small input consistent with the module: (N, 3, H_in, W_in), H/W divisible by 4
    images = jax.random.normal(k_img, (2, 3, 32, 32), jnp.float32)

    out = pyramid_feat2d_forward(images, params)
    out = jax.block_until_ready(out)

    feat = out["layer1_feat2d"]
    assert feat.shape == (2, 64, 8, 8), feat.shape
    assert feat.dtype == jnp.float32
    assert bool(jnp.all(feat >= 0.0))  # ReLU

    ref = _reference_forward(images, params)
    max_err = float(jnp.max(jnp.abs(feat - ref)))
    assert max_err < 5e-2, max_err    # bf16 kernel path vs f32 reference
    print("KERNEL_OK")
</pallas_src>

<mosaic_0001>
module attributes {stable_mosaic.version = 11 : i64} {
  func.func @_fused_pyramid_kernel(%arg0: i32, %arg1: i32, %arg2: memref<1x64x64xbf16, #tpu.memory_space<vmem>>, %arg3: memref<256x64xbf16, #tpu.memory_space<vmem>>, %arg4: memref<64x256xbf16, #tpu.memory_space<vmem>>, %arg5: memref<64x1xf32, #tpu.memory_space<vmem>>, %arg6: memref<1x64x64xf32, #tpu.memory_space<vmem>>) attributes {dimension_semantics = [#tpu.dimension_semantics<parallel>, #tpu.dimension_semantics<parallel>], iteration_bounds = array<i64: 2, 1>, scalar_prefetch = 0 : i64, scratch_operands = 0 : i64, tpu.core_type = #tpu.core_type<tc>, window_params = [{transform_indices = @transform_0, window_bounds = array<i64: 1, 64, 64>}, {pipeline_mode = #tpu.pipeline_mode<synchronous>, transform_indices = @transform_1, window_bounds = array<i64: 256, 64>}, {pipeline_mode = #tpu.pipeline_mode<synchronous>, transform_indices = @transform_2, window_bounds = array<i64: 64, 256>}, {pipeline_mode = #tpu.pipeline_mode<synchronous>, transform_indices = @transform_3, window_bounds = array<i64: 64, 1>}, {transform_indices = @transform_4, window_bounds = array<i64: 1, 64, 64>}]} {
    %c0 = arith.constant 0 : index
    %c0_0 = arith.constant 0 : index
    %0 = vector.load %arg3[%c0, %c0_0] : memref<256x64xbf16, #tpu.memory_space<vmem>>, vector<256x64xbf16>
    %c0_1 = arith.constant 0 : index
    %c0_2 = arith.constant 0 : index
    %c0_3 = arith.constant 0 : index
    %1 = vector.load %arg2[%c0_1, %c0_2, %c0_3] : memref<1x64x64xbf16, #tpu.memory_space<vmem>>, vector<1x64x64xbf16>
    %2 = vector.shape_cast %1 : vector<1x64x64xbf16> to vector<64x64xbf16>
    %cst = arith.constant dense<0.000000e+00> : vector<256x64xf32>
    %3 = tpu.matmul %0, %2, %cst {dimension_numbers = #tpu.dot_dimension_numbers<[1], [0], [0], [1], [0, 0, 1, 1], [], []>} : vector<256x64xbf16>, vector<64x64xbf16>, vector<256x64xf32> -> vector<256x64xf32>
    %cst_4 = arith.constant 0.000000e+00 : f32
    %4 = vector.broadcast %cst_4 : f32 to vector<256x64xf32>
    %5 = arith.maximumf %3, %4 : vector<256x64xf32>
    %6 = arith.truncf %5 : vector<256x64xf32> to vector<256x64xbf16>
    %c0_5 = arith.constant 0 : index
    %c0_6 = arith.constant 0 : index
    %7 = vector.load %arg4[%c0_5, %c0_6] : memref<64x256xbf16, #tpu.memory_space<vmem>>, vector<64x256xbf16>
    %cst_7 = arith.constant dense<0.000000e+00> : vector<64x64xf32>
    %8 = tpu.matmul %7, %6, %cst_7 {dimension_numbers = #tpu.dot_dimension_numbers<[1], [0], [0], [1], [0, 0, 1, 1], [], []>} : vector<64x256xbf16>, vector<256x64xbf16>, vector<64x64xf32> -> vector<64x64xf32>
    %c0_8 = arith.constant 0 : index
    %c0_9 = arith.constant 0 : index
    %9 = vector.load %arg5[%c0_8, %c0_9] : memref<64x1xf32, #tpu.memory_space<vmem>>, vector<64x1xf32>
    %10 = vector.broadcast %9 : vector<64x1xf32> to vector<64x64xf32>
    %11 = arith.addf %8, %10 : vector<64x64xf32>
    %cst_10 = arith.constant 0.000000e+00 : f32
    %12 = vector.broadcast %cst_10 : f32 to vector<64x64xf32>
    %13 = arith.maximumf %11, %12 : vector<64x64xf32>
    %c0_11 = arith.constant 0 : index
    %c0_12 = arith.constant 0 : index
    %c0_13 = arith.constant 0 : index
    %14 = vector.load %arg6[%c0_11, %c0_12, %c0_13] : memref<1x64x64xf32, #tpu.memory_space<vmem>>, vector<1x64x64xf32>
    %15 = vector.shape_cast %14 : vector<1x64x64xf32> to vector<64x64xf32>
    %16 = vector.shape_cast %13 : vector<64x64xf32> to vector<1x64x64xf32>
    tpu.vector_store %arg6[%c0_11, %c0_12, %c0_13], %16 {strides = array<i32>} : memref<1x64x64xf32, #tpu.memory_space<vmem>>, vector<1x64x64xf32>,
    return
  }
  func.func @transform_0(%arg0: i32, %arg1: i32) -> (i32, i32, i32) {
    %c0_i32 = arith.constant 0 : i32
    %c0_i32_0 = arith.constant 0 : i32
    return %arg0, %c0_i32, %arg1 : i32, i32, i32
  }
  func.func @transform_1(%arg0: i32, %arg1: i32) -> (i32, i32) {
    %c0_i32 = arith.constant 0 : i32
    %c0_i32_0 = arith.constant 0 : i32
    %c0_i32_1 = arith.constant 0 : i32
    return %c0_i32, %c0_i32_0 : i32, i32
  }
  func.func @transform_2(%arg0: i32, %arg1: i32) -> (i32, i32) {
    %c0_i32 = arith.constant 0 : i32
    %c0_i32_0 = arith.constant 0 : i32
    %c0_i32_1 = arith.constant 0 : i32
    return %c0_i32, %c0_i32_0 : i32, i32
  }
  func.func @transform_3(%arg0: i32, %arg1: i32) -> (i32, i32) {
    %c0_i32 = arith.constant 0 : i32
    %c0_i32_0 = arith.constant 0 : i32
    %c0_i32_1 = arith.constant 0 : i32
    return %c0_i32, %c0_i32_0 : i32, i32
  }
  func.func @transform_4(%arg0: i32, %arg1: i32) -> (i32, i32, i32) {
    %c0_i32 = arith.constant 0 : i32
    %c0_i32_0 = arith.constant 0 : i32
    return %arg0, %c0_i32, %arg1 : i32, i32, i32
  }
}

</mosaic_0001>

<bundles_post_ra>
// kernel: pyramid_feat2d_forward.1
= control target key start
LH: loop header
LB: loop body
LE: loop exit
PB: predicated region body
PF: predicated region fallthrough
CT: control target
= control target key end

     0   :  { %s1158_s15 = smov 0   ;;  %s1160_s16 = smov 0   ;;  %s1325_s0 = inlined_call_operand.vmem [shape: bf16[2,64,64], index: 0, kind: input, shape index: {}]   ;;  %s1326_s1 = inlined_call_operand.vmem [shape: bf16[256,64], index: 1, kind: input, shape index: {}]   ;;  %s1327_s2 = inlined_call_operand.vmem [shape: bf16[64,256], index: 2, kind: input, shape index: {}]   ;;  %s1328_s3 = inlined_call_operand.vmem [shape: f32[64,1], index: 3, kind: input, shape index: {}]   ;;  %s1329_s4 = inlined_call_operand.vmem [shape: f32[2,64,64], index: 4, kind: output, shape index: {}]  }
   0x1   :  { %s1162_s17 = smov 0  }
   0x2 LB: > { %s26_s18 = sadd.s32 1, %s1126_s16  ;;  %p896_p0 = scmp.ge.s32.totalorder %s1130_s17, 1  ;;  %s1130_s17 = sphi %s1162_s17, %s14_s17   ;;  %s1126_s16 = sphi %s1160_s16, %s1331_s16   ;;  %s1122_s15 = sphi %s1158_s15, %s1330_s15  }
   0x3   : > { %p28_p1 = scmp.ge.s32.totalorder %s26_s18, 2  ;;  %p181_p2 = scmp.lt.s32.totalorder %s1130_s17, 3 }
   0x5   : > { %s1333_s18 = smov (%p28_p1, %s26_s18), 0  ;;  %p182_p3 = pnand %p896_p0, %p181_p2 }
   0x6   : > { %p213_p4 = scmp.lt.s32.totalorder (!%p182_p3), %s1122_s15, 1  ;;  %v1080_v0 = vld [vmem:[%s1326_s1] sm:$0xff] (!%p182_p3)   ;;  %vm374_vm0 = vcmask (!%p182_p3), 523264   ;;  %v1081_v5 = vld [vmem:[%s1326_s1 + $0x8] sm:$0xff] (!%p182_p3)   ;;  %v1082_v6 = vld [vmem:[%s1326_s1 + $0x10] sm:$0xff] (!%p182_p3)   ;;  %v1132_v23 = vmov (!%p182_p3), 0  }
   0x7   : > { %185 = sbr.rel (%p182_p3) target bundleno = 563 (0x233), region = 36  ;;  %1017 = vmatprep.mubr.msk.bf16.mxu0 (!%p182_p3), %vm374_vm0, %v1080_v0  ;;  %v1083_v7 = vld [vmem:[%s1326_s1 + $0x18] sm:$0xff] (!%p182_p3)   ;;  %v1084_v8 = vld [vmem:[%s1326_s1 + $0x20] sm:$0xff] (!%p182_p3)   ;;  %v1085_v9 = vld [vmem:[%s1326_s1 + $0x28] sm:$0xff] (!%p182_p3)   ;;  %1074 = vset.pattern.permute.xlu0 (!%p182_p3), %v1132_v23 }
   0x8   : > { %v1086_v10 = vld [vmem:[%s1326_s1 + $0x30] sm:$0xff] (!%p182_p3)   ;;  %v1087_v11 = vld [vmem:[%s1326_s1 + $0x38] sm:$0xff] (!%p182_p3)   ;;  %v1088_v12 = vld [vmem:[%s1326_s1 + $0x40] sm:$0xff] (!%p182_p3)   ;;  %1075 = vset.pattern.permute.xlu1 (!%p182_p3), %v1132_v23 }
   0x9   : > { %v1089_v13 = vld [vmem:[%s1326_s1 + $0x48] sm:$0xff] (!%p182_p3)   ;;  %v1090_v14 = vld [vmem:[%s1326_s1 + $0x50] sm:$0xff] (!%p182_p3)   ;;  %v1091_v15 = vld [vmem:[%s1326_s1 + $0x58] sm:$0xff] (!%p182_p3)  }
   0xa   : > { %v1092_v16 = vld [vmem:[%s1326_s1 + $0x60] sm:$0xff] (!%p182_p3)   ;;  %v1093_v17 = vld [vmem:[%s1326_s1 + $0x68] sm:$0xff] (!%p182_p3)   ;;  %v1094_v18 = vld [vmem:[%s1326_s1 + $0x70] sm:$0xff] (!%p182_p3)  }
   0xb   : > { %v1095_v19 = vld [vmem:[%s1326_s1 + $0x78] sm:$0xff] (!%p182_p3)   ;;  %v1098_v20 = vld [vmem:[%s1327_s2 + $0x4] ss:$8 sps:$4 sm:$0xff] (!%p182_p3)   ;;  %v642_v22 = vld [vmem:[%s1328_s3 + $0x10] sm:$0xff] (!%p182_p3) }
   0xc   : > { %760 = vmatprep.mubr.bf16.mxu1 (!%p182_p3), %v1098_v20  ;;  %v640_v21 = vld [vmem:[%s1328_s3] sm:$0xff] (!%p182_p3)  ;;  %660 = vperm.xlu1 (!%p182_p3), %1075, %v642_v22   ;;  %v641_v24 = vld [vmem:[%s1328_s3 + $0x8] sm:$0xff] (!%p182_p3)  ;;  %v643_v25 = vld [vmem:[%s1328_s3 + $0x18] sm:$0xff] (!%p182_p3) }
   0xd   : > { %650 = vperm.xlu0 (!%p182_p3), %1074, %v640_v21   ;;  %v645_v26 = vld [vmem:[%s1328_s3 + $0x28] sm:$0xff] (!%p182_p3)  ;;  %v644_v27 = vld [vmem:[%s1328_s3 + $0x20] sm:$0xff] (!%p182_p3)  ;;  %v647_v28 = vld [vmem:[%s1328_s3 + $0x38] sm:$0xff] (!%p182_p3) }
   0xe   : > { %s1335_s15 = smov (!%p213_p4, %s1122_s15), 1  ;;  %v646_v29 = vld [vmem:[%s1328_s3 + $0x30] sm:$0xff] }
   0xf   : > { %s947_s21 = sshll.u32 %s1335_s15, 5 }
  0x10   : > { %s220_s24 = scalar_lea.vmem %s1325_s0, %s947_s21  ;;  %665 = vperm.xlu1 %1075, %v643_v25   ;;  %s948_s21 = sshll.u32 %s1335_s15, 6 }
  0x11   : > { %v1076_v1 = vld [vmem:[%s220_s24] sm:$0xff]   ;;  %v1077_v2 = vld [vmem:[%s220_s24 + $0x8] sm:$0xff]   ;;  %v1078_v3 = vld [vmem:[%s220_s24 + $0x10] sm:$0xff]   ;;  %655 = vperm.xlu0 %1074, %v641_v24  }
  0x12   : > { %1009 = vmatprep.subr.bf16.mxu0 %v1076_v1  ;;  %v1079_v4 = vld [vmem:[%s220_s24 + $0x18] sm:$0xff]   ;;  %s1298_s24 = scalar_lea.vmem %s1329_s4, %s948_s21 }
  0x13   : > { %1010 = vmatpush3.bf16.msra.mxu0 %v1076_v1 }
  0x14   : > { %1011 = vmatprep.subr.bf16.mxu0 %v1077_v2  ;;  %675 = vperm.xlu1 %1075, %v645_v26  }
  0x15   : > { %670 = vperm.xlu0 %1074, %v644_v27  }
  0x17   : > { %1012 = vmatpush3.bf16.msra.mxu0 %v1077_v2 }
  0x18   : > { %1013 = vmatprep.subr.bf16.mxu0 %v1078_v3  ;;  %685 = vperm.xlu1 %1075, %v647_v28  }
  0x19   : > { %680 = vperm.xlu0 %1074, %v646_v29  }
  0x1b   : > { %1014 = vmatpush3.bf16.msra.mxu0 %v1078_v3 }
  0x1c   : > { %1015 = vmatprep.subr.bf16.mxu0 %v1079_v4 }
  0x1f   : > { %1016 = vmatpush3.bf16.msra.mxu0 %v1079_v4 }
  0x22   : > { %1018 = vmatmul.mubr.msk.bf16.vlgmr.msra.gmra.mrb[0].mxu0 %vm374_vm0, %v1081_v5 }
  0x23   : > { %1021 = vmatprep.mubr.msk.bf16.mxu0 %vm374_vm0, %v1082_v6 }
  0x2a   : > { %1022 = vmatmul.mubr.msk.bf16.gmra.mrb[4].mxu0 %vm374_vm0, %v1083_v7 }
  0x2b   : > { %1025 = vmatprep.mubr.msk.bf16.mxu0 %vm374_vm0, %v1084_v8 }
  0x32   : > { %1026 = vmatmul.mubr.msk.bf16.gmra.mrb[8].mxu0 %vm374_vm0, %v1085_v9 }
  0x33   : > { %1029 = vmatprep.mubr.msk.bf16.mxu0 %vm374_vm0, %v1086_v10 }
  0x3a   : > { %1030 = vmatmul.mubr.msk.bf16.gmra.mrb[12].mxu0 %vm374_vm0, %v1087_v11 }
  0x3b   : > { %1033 = vmatprep.mubr.msk.bf16.mxu0 %vm374_vm0, %v1088_v12 }
  0x42   : > { %1034 = vmatmul.mubr.msk.bf16.gmra.mrb[16].mxu0 %vm374_vm0, %v1089_v13 }
  0x43   : > { %1037 = vmatprep.mubr.msk.bf16.mxu0 %vm374_vm0, %v1090_v14 }
  0x4a   : > { %1038 = vmatmul.mubr.msk.bf16.gmra.mrb[20].mxu0 %vm374_vm0, %v1091_v15 }
  0x4b   : > { %1041 = vmatprep.mubr.msk.bf16.mxu0 %vm374_vm0, %v1092_v16 }
  0x52   : > { %1042 = vmatmul.mubr.msk.bf16.gmra.mrb[24].mxu0 %vm374_vm0, %v1093_v17 }
  0x53   : > { %1045 = vmatprep.mubr.msk.bf16.mxu0 %vm374_vm0, %v1094_v18 }
  0x5a   : > { %1046 = vmatmul.mubr.msk.bf16.gmra.mrb[28].mxu0 %vm374_vm0, %v1095_v19 }
  0xf5   : > { %v1019_v30 = vpop.f32.mrb[0].mxu0 }
  0xf6   : > { %v457_v31 = vpop.f32.mrb[1].mxu0  ;;  %v586_v33 = vmax.f32 %v1019_v30, 0.0 }
  0xf7   : > { %v1020_v32 = vpop.f32.mrb[2].mxu0  ;;  %v584_v36 = vmax.f32 %v457_v31, 0.0 }
  0xf8   : > { %v587_v34 = vmax.f32 %v1020_v32, 0.0  ;;  %v460_v35 = vpop.f32.mrb[3].mxu0 }
  0xf9   : > { %v585_v37 = vmax.f32 %v460_v35, 0.0 }
  0xfa   : > { %v617_v38 = vpack.c.bf16 %v587_v34, %v586_v33 }
  0xfb   : > { %v616_v39 = vpack.c.bf16 %v585_v37, %v584_v36 }
  0xfd   : > { %v1023_v40 = vpop.f32.mrb[4].mxu0 }
  0xfe   : > { %v473_v41 = vpop.f32.mrb[5].mxu0  ;;  %v590_v43 = vmax.f32 %v1023_v40, 0.0 }
  0xff   : > { %v1024_v42 = vpop.f32.mrb[6].mxu0  ;;  %v588_v46 = vmax.f32 %v473_v41, 0.0 }
 0x100   : > { %v591_v44 = vmax.f32 %v1024_v42, 0.0  ;;  %v476_v45 = vpop.f32.mrb[7].mxu0 }
 0x101   : > { %v589_v47 = vmax.f32 %v476_v45, 0.0 }
 0x102   : > { %v619_v48 = vpack.c.bf16 %v591_v44, %v590_v43 }
 0x103   : > { %v618_v49 = vpack.c.bf16 %v589_v47, %v588_v46  ;;  %v1096_v46 = vld [vmem:[%s1327_s2] ss:$8 sps:$4 sm:$0xff]   ;;  %v1099_v47 = vld [vmem:[%s1327_s2 + $0x14] ss:$8 sps:$4 sm:$0xff]  }
 0x105   : > { %v1027_v50 = vpop.f32.mrb[8].mxu0 }
 0x106   : > { %v489_v51 = vpop.f32.mrb[9].mxu0  ;;  %v594_v53 = vmax.f32 %v1027_v50, 0.0  ;;  %v1104_v50 = vld [vmem:[%s1327_s2 + $0x20] ss:$8 sps:$4 sm:$0xff]  }
 0x107   : > { %v1028_v52 = vpop.f32.mrb[10].mxu0  ;;  %v592_v56 = vmax.f32 %v489_v51, 0.0  ;;  %v1105_v51 = vld [vmem:[%s1327_s2 + $0x34] ss:$8 sps:$4 sm:$0xff]  }
 0x108   : > { %v595_v54 = vmax.f32 %v1028_v52, 0.0  ;;  %v492_v55 = vpop.f32.mrb[11].mxu0  ;;  %v1107_v52 = vld [vmem:[%s1327_s2 + $0x30] ss:$8 sps:$4 sm:$0xff]  }
 0x109   : > { %v593_v57 = vmax.f32 %v492_v55, 0.0 }
 0x10a   : > { %v621_v58 = vpack.c.bf16 %v595_v54, %v594_v53  ;;  %v651_v53 = vpop.permute.xlu0 %650 }
 0x10b   : > { %v620_v59 = vpack.c.bf16 %v593_v57, %v592_v56 }
 0x10d   : > { %v1031_v60 = vpop.f32.mrb[12].mxu0 }
 0x10e   : > { %v505_v61 = vpop.f32.mrb[13].mxu0  ;;  %v598_v63 = vmax.f32 %v1031_v60, 0.0 }
 0x10f   : > { %v1032_v62 = vpop.f32.mrb[14].mxu0  ;;  %v596_v2 = vmax.f32 %v505_v61, 0.0 }
 0x110   : > { %v599_v0 = vmax.f32 %v1032_v62, 0.0  ;;  %v508_v1 = vpop.f32.mrb[15].mxu0 }
 0x111   : > { %v597_v3 = vmax.f32 %v508_v1, 0.0 }
 0x112   : > { %v623_v4 = vpack.c.bf16 %v599_v0, %v598_v63  ;;  %v661_v0 = vpop.permute.xlu1 %660 }
 0x113   : > { %v622_v5 = vpack.c.bf16 %v597_v3, %v596_v2 }
 0x115   : > { %v1035_v6 = vpop.f32.mrb[16].mxu0 }
 0x116   : > { %v521_v7 = vpop.f32.mrb[17].mxu0  ;;  %v602_v9 = vmax.f32 %v1035_v6, 0.0 }
 0x117   : > { %v1036_v8 = vpop.f32.mrb[18].mxu0  ;;  %v600_v12 = vmax.f32 %v521_v7, 0.0 }
 0x118   : > { %v603_v10 = vmax.f32 %v1036_v8, 0.0  ;;  %v524_v11 = vpop.f32.mrb[19].mxu0 }
 0x119   : > { %v601_v13 = vmax.f32 %v524_v11, 0.0 }
 0x11a   : > { %v625_v14 = vpack.c.bf16 %v603_v10, %v602_v9  ;;  %v666_v9 = vpop.permute.xlu1 %665 }
 0x11b   : > { %v624_v15 = vpack.c.bf16 %v601_v13, %v600_v12 }
 0x11d   : > { %v1039_v16 = vpop.f32.mrb[20].mxu0  ;;  %969 = vmatprep.subr.bf16.mxu1 %v624_v15 }
 0x11e   : > { %v537_v17 = vpop.f32.mrb[21].mxu0  ;;  %970 = vmatpush3.bf16.msra.mxu1 %v616_v39  ;;  %v606_v19 = vmax.f32 %v1039_v16, 0.0 }
 0x11f   : > { %v1040_v18 = vpop.f32.mrb[22].mxu0  ;;  %971 = vmatprep.subr.bf16.mxu1 %v625_v14  ;;  %v604_v22 = vmax.f32 %v537_v17, 0.0 }
 0x120   : > { %v607_v20 = vmax.f32 %v1040_v18, 0.0  ;;  %v540_v21 = vpop.f32.mrb[23].mxu0 }
 0x121   : > { %v605_v23 = vmax.f32 %v540_v21, 0.0  ;;  %v676_v21 = vpop.permute.xlu1 %675 }
 0x122   : > { %v627_v24 = vpack.c.bf16 %v607_v20, %v606_v19  ;;  %972 = vmatpush3.bf16.msra.mxu1 %v617_v38 }
 0x123   : > { %v626_v25 = vpack.c.bf16 %v605_v23, %v604_v22 }
 0x125   : > { %v1043_v26 = vpop.f32.mrb[24].mxu0  ;;  %973 = vmatprep.subr.bf16.mxu1 %v626_v25 }
 0x126   : > { %v553_v27 = vpop.f32.mrb[25].mxu0  ;;  %974 = vmatpush3.bf16.msra.mxu1 %v618_v49  ;;  %v610_v29 = vmax.f32 %v1043_v26, 0.0  ;;  %v1102_v49 = vld [vmem:[%s1327_s2 + $0x24] ss:$8 sps:$4 sm:$0xff]  }
 0x127   : > { %v1044_v28 = vpop.f32.mrb[26].mxu0  ;;  %975 = vmatprep.subr.bf16.mxu1 %v627_v24  ;;  %v608_v32 = vmax.f32 %v553_v27, 0.0 }
 0x128   : > { %v611_v30 = vmax.f32 %v1044_v28, 0.0  ;;  %v556_v31 = vpop.f32.mrb[27].mxu0 }
 0x129   : > { %v609_v33 = vmax.f32 %v556_v31, 0.0 }
 0x12a   : > { %v629_v34 = vpack.c.bf16 %v611_v30, %v610_v29  ;;  %976 = vmatpush3.bf16.msra.mxu1 %v619_v48  ;;  %v1101_v48 = vld [vmem:[%s1327_s2 + $0x10] ss:$8 sps:$4 sm:$0xff]  }
 0x12b   : > { %v628_v35 = vpack.c.bf16 %v609_v33, %v608_v32  ;;  %v686_v33 = vpop.permute.xlu1 %685 }
 0x12d   : > { %v1047_v36 = vpop.f32.mrb[28].mxu0  ;;  %977 = vmatprep.subr.bf16.mxu1 %v628_v35 }
 0x12e   : > { %v569_v37 = vpop.f32.mrb[29].mxu0  ;;  %978 = vmatpush3.bf16.msra.mxu1 %v620_v59  ;;  %v614_v39 = vmax.f32 %v1047_v36, 0.0  ;;  %v656_v59 = vpop.permute.xlu0 %655 }
 0x12f   : > { %v1048_v38 = vpop.f32.mrb[30].mxu0  ;;  %979 = vmatprep.subr.bf16.mxu1 %v629_v34  ;;  %v612_v42 = vmax.f32 %v569_v37, 0.0 }
 0x130   : > { %v615_v40 = vmax.f32 %v1048_v38, 0.0  ;;  %v572_v41 = vpop.f32.mrb[31].mxu0 }
 0x131   : > { %v613_v43 = vmax.f32 %v572_v41, 0.0 }
 0x132   : > { %v631_v44 = vpack.c.bf16 %v615_v40, %v614_v39  ;;  %980 = vmatpush3.bf16.msra.mxu1 %v621_v58  ;;  %v671_v17 = vpop.permute.xlu0 %670 }
 0x133   : > { %v630_v45 = vpack.c.bf16 %v613_v43, %v612_v42 }
 0x135   : > { %981 = vmatprep.subr.bf16.mxu1 %v630_v45 }
 0x136   : > { %982 = vmatpush3.bf16.msra.mxu1 %v622_v5  ;;  %v681_v29 = vpop.permute.xlu0 %680 }
 0x137   : > { %983 = vmatprep.subr.bf16.mxu1 %v631_v44 }
 0x13a   : > { %984 = vmatpush3.bf16.msra.mxu1 %v623_v4 }
 0x13d   : > { %761 = vmatmul.mubr.bf16.vlgmr.msra.gmra.mrb[0].mxu1 %v1096_v46 }
 0x13e   : > { %768 = vmatprep.mubr.bf16.mxu1 %v1099_v47 }
 0x145   : > { %769 = vmatmul.mubr.bf16.gmra.mrb[4].mxu1 %v1101_v48 }
 0x146   : > { %776 = vmatprep.mubr.bf16.mxu1 %v1102_v49 }
 0x14d   : > { %777 = vmatmul.mubr.bf16.gmra.mrb[8].mxu1 %v1104_v50 }
 0x14e   : > { %784 = vmatprep.mubr.bf16.mxu1 %v1105_v51 }
 0x155   : > { %785 = vmatmul.mubr.bf16.gmra.mrb[12].mxu1 %v1107_v52 }
 0x210   : > { %v985_v54 = vpop.f32.mrb[0].mxu1 }
 0x211   : > { %v986_v55 = vpop.f32.mrb[1].mxu1 }
 0x212   : > { %v987_v56 = vadd.f32 %v986_v55, %v985_v54  ;;  %v988_v57 = vpop.f32.mrb[2].mxu1 }
 0x213   : > { %v989_v58 = vpop.f32.mrb[3].mxu1 }
 0x214   : > { %v763_v60 = vadd.f32 %v987_v56, %v651_v53  ;;  %v990_v61 = vadd.f32 %v989_v58, %v988_v57 }
 0x216   : > { %v793_v62 = vmax.f32 %v763_v60, 0.0  ;;  %v766_v63 = vadd.f32 %v990_v61, %v656_v59 }
 0x218   : > { %801 = vst.msk [vmem:[%s1298_s24] sm:$0xff] %vm374_vm0, %v793_v62  ;;  %v794_v1 = vmax.f32 %v766_v63, 0.0  ;;  %v991_v2 = vpop.f32.mrb[4].mxu1 }
 0x219   : > { %v992_v3 = vpop.f32.mrb[5].mxu1 }
 0x21a   : > { %802 = vst.msk [vmem:[%s1298_s24 + $0x8] sm:$0xff] %vm374_vm0, %v794_v1  ;;  %v993_v4 = vadd.f32 %v992_v3, %v991_v2  ;;  %v994_v5 = vpop.f32.mrb[6].mxu1 }
 0x21b   : > { %v995_v6 = vpop.f32.mrb[7].mxu1 }
 0x21c   : > { %v771_v7 = vadd.f32 %v993_v4, %v661_v0  ;;  %v996_v8 = vadd.f32 %v995_v6, %v994_v5 }
 0x21e   : > { %v795_v10 = vmax.f32 %v771_v7, 0.0  ;;  %v774_v11 = vadd.f32 %v996_v8, %v666_v9 }
 0x220   : > { %803 = vst.msk [vmem:[%s1298_s24 + $0x10] sm:$0xff] %vm374_vm0, %v795_v10  ;;  %v796_v12 = vmax.f32 %v774_v11, 0.0  ;;  %v997_v13 = vpop.f32.mrb[8].mxu1 }
 0x221   : > { %v998_v14 = vpop.f32.mrb[9].mxu1 }
 0x222   : > { %804 = vst.msk [vmem:[%s1298_s24 + $0x18] sm:$0xff] %vm374_vm0, %v796_v12  ;;  %v999_v15 = vadd.f32 %v998_v14, %v997_v13  ;;  %v1000_v16 = vpop.f32.mrb[10].mxu1 }
 0x223   : > { %v1001_v18 = vpop.f32.mrb[11].mxu1 }
 0x224   : > { %v779_v19 = vadd.f32 %v999_v15, %v671_v17  ;;  %v1002_v20 = vadd.f32 %v1001_v18, %v1000_v16 }
 0x226   : > { %v797_v22 = vmax.f32 %v779_v19, 0.0  ;;  %v782_v23 = vadd.f32 %v1002_v20, %v676_v21 }
 0x228   : > { %805 = vst.msk [vmem:[%s1298_s24 + $0x20] sm:$0xff] %vm374_vm0, %v797_v22  ;;  %v798_v24 = vmax.f32 %v782_v23, 0.0  ;;  %v1003_v25 = vpop.f32.mrb[12].mxu1 }
 0x229   : > { %v1004_v26 = vpop.f32.mrb[13].mxu1 }
 0x22a   : > { %806 = vst.msk [vmem:[%s1298_s24 + $0x28] sm:$0xff] %vm374_vm0, %v798_v24  ;;  %v1005_v27 = vadd.f32 %v1004_v26, %v1003_v25  ;;  %v1006_v28 = vpop.f32.mrb[14].mxu1 }
 0x22b   : > { %v1007_v30 = vpop.f32.mrb[15].mxu1 }
 0x22c   : > { %v787_v31 = vadd.f32 %v1005_v27, %v681_v29  ;;  %v1008_v32 = vadd.f32 %v1007_v30, %v1006_v28 }
 0x22e   : > { %v799_v34 = vmax.f32 %v787_v31, 0.0  ;;  %v790_v35 = vadd.f32 %v1008_v32, %v686_v33 }
 0x230   : > { %807 = vst.msk [vmem:[%s1298_s24 + $0x30] sm:$0xff] %vm374_vm0, %v799_v34  ;;  %v800_v36 = vmax.f32 %v790_v35, 0.0 }
 0x232   : > { %808 = vst.msk [vmem:[%s1298_s24 + $0x38] sm:$0xff] %vm374_vm0, %v800_v36 }
 0x233 PF: > { %s14_s17 = sadd.s32 1, %s1130_s17   ;;  %s1330_s15 = smov %s1126_s16 }
 0x234   : > { %p11_p5 = scmp.ge.s32.totalorder %s14_s17, 4   ;;  %s1331_s16 = smov %s1333_s18 }
 0x236   :  { %13 = sbr.rel (!%p11_p5) target bundleno = 2 (0x2), region = 66 }

</bundles_post_ra>
